<compile_context>
chip_gen: v5e
topology: v5e:2x2
jax: 0.10.0
libtpu: 0.0.40
codegen_flags: <defaults>
</compile_context>

<pallas_src>
import functools

import jax
import jax.numpy as jnp
from jax.experimental import pallas as pl
from jax.experimental.pallas import tpu as pltpu


# TODO(synk): setLayers() allows an arbitrary runtime layer list; this kernel is
# specialized to the quadrant-classifier config setLayers([(2, 32), (32, 32), (32, 4)]).
IN_DIM, HID, OUT_DIM = 2, 32, 4
LAYER_DIMS = [(IN_DIM, HID), (HID, HID), (HID, OUT_DIM)]

# Sublane packing factors: fill all 8 sublanes of the (8,128)-tiled HBM activation arrays.
N_SUB = 8 // IN_DIM               # 4 batch sub-chunks stacked on the input sublanes
N_HALF = 8 // OUT_DIM             # 2 batch halves stacked on the output sublanes
PACK_IN_ROWS = N_SUB * IN_DIM     # 8
PACK_OUT_ROWS = N_HALF * OUT_DIM  # 8

TB_DEFAULT = 512                  # batch tile; must be a multiple of N_SUB*128 = 512

# Packed-parameter slab layout (f32), all offsets static:
#   rows 0      .. HID        : cols 0:IN_DIM = W1 [HID, IN_DIM], col HID = b1
#   rows HID    .. 2*HID      : cols 0:HID    = W2 [HID, HID],    col HID = b2
#   rows 2*HID  .. 2*HID+OUT  : cols 0:HID    = W3 [OUT, HID],    col HID = b3
_R1, _R2, _R3 = 0, HID, 2 * HID
_SLAB_ROWS = ((2 * HID + OUT_DIM + 7) // 8) * 8   # 72 (sublane-padded)
_SLAB_COLS = HID + 1                              # weight columns | bias column
_BCOL = HID


def _mlp_kernel(params_ref, xp_ref, op_ref):
    xp = xp_ref[...]                               # [8, TBL] sublane-packed activations
    tbl = xp.shape[1]
    tb = N_SUB * tbl
    tbh = tb // N_HALF

    w1 = params_ref[_R1:_R1 + HID, 0:IN_DIM]              # [HID, 2]
    b1 = params_ref[_R1:_R1 + HID, _BCOL:_BCOL + 1]       # [HID, 1]
    w2 = params_ref[_R2:_R2 + HID, 0:HID]                  # [HID, HID]
    b2 = params_ref[_R2:_R2 + HID, _BCOL:_BCOL + 1]       # [HID, 1]
    w3 = params_ref[_R3:_R3 + OUT_DIM, 0:HID]              # [OUT, HID]
    b3 = params_ref[_R3:_R3 + OUT_DIM, _BCOL:_BCOL + 1]   # [OUT, 1]

    # Un-pack the 4 batch sub-chunks into full-width [1, TB] lane vectors
    # (static sublane slices + lane concatenation; pure VMEM work).
    x0 = jnp.concatenate(
        [xp[IN_DIM * c:IN_DIM * c + 1, :] for c in range(N_SUB)], axis=1)   # [1, TB]
    x1 = jnp.concatenate(
        [xp[IN_DIM * c + 1:IN_DIM * c + 2, :] for c in range(N_SUB)], axis=1)

    # ---- Layer 1: K=2 -> two VPU broadcast-FMAs (skip the MXU).
    h = w1[:, 0:1] * x0 + w1[:, 1:2] * x1 + b1
    h = jnp.maximum(h, 0.0)                                # [HID, TB]

    # ---- Layer 2: 32x32 on the MXU, f32 accumulation.
    h = jnp.dot(w2, h, preferred_element_type=jnp.float32) + b2
    h = jnp.maximum(h, 0.0)                                # [HID, TB]

    # ---- Layer 3 (no ReLU): [OUT, HID] @ [HID, TB].
    out = jnp.dot(w3, h, preferred_element_type=jnp.float32) + b3   # [OUT, TB]

    # Re-pack: two batch halves stacked on sublanes -> dense [8, TBH] store.
    op_ref[0:OUT_DIM, :] = out[:, :tbh].astype(op_ref.dtype)
    op_ref[OUT_DIM:PACK_OUT_ROWS, :] = out[:, tbh:].astype(op_ref.dtype)


@functools.lru_cache(maxsize=1)
def _dimension_semantics():
    # Only CORE_PARALLEL changes codegen / engages v7x's 2nd TensorCore;
    # "parallel" vs "arbitrary" is a measured no-op, so use the safe default elsewhere.
    try:
        kind = jax.devices()[0].device_kind.lower()
    except Exception:
        kind = ""
    if "v7" in kind or "7x" in kind:
        return (pltpu.CORE_PARALLEL,)
    return ("arbitrary",)


def _pallas_forward_packed(xp, slab, tb):
    assert tb % (N_SUB * 128) == 0, "tb must be a multiple of 512"
    tbl = tb // N_SUB
    tbh = tb // N_HALF
    n_tiles = xp.shape[1] // tbl
    return pl.pallas_call(
        _mlp_kernel,
        out_shape=jax.ShapeDtypeStruct((PACK_OUT_ROWS, n_tiles * tbh), jnp.float32),
        grid_spec=pltpu.PrefetchScalarGridSpec(
            num_scalar_prefetch=0,
            grid=(n_tiles,),
            in_specs=[
                # Param slab: constant index_map -> DMA'd once, VMEM-resident all grid steps.
                pl.BlockSpec((_SLAB_ROWS, _SLAB_COLS), lambda i: (0, 0)),
                # Packed activation tile, pipelined (double-buffered) along batch.
                pl.BlockSpec((PACK_IN_ROWS, tbl), lambda i: (0, i)),
            ],
            out_specs=pl.BlockSpec((PACK_OUT_ROWS, tbh), lambda i: (0, i)),
        ),
        compiler_params=pltpu.CompilerParams(
            dimension_semantics=_dimension_semantics(),
        ),
    )(slab, xp)


def pack_params(params):
    """Pack (W [out,in], b [out]) PyTorch-layout params into one f32 slab (call ONCE at init)."""
    (w1, b1), (w2, b2), (w3, b3) = params
    slab = jnp.zeros((_SLAB_ROWS, _SLAB_COLS), jnp.float32)
    slab = slab.at[_R1:_R1 + HID, 0:IN_DIM].set(w1)
    slab = slab.at[_R1:_R1 + HID, _BCOL].set(b1)
    slab = slab.at[_R2:_R2 + HID, 0:HID].set(w2)
    slab = slab.at[_R2:_R2 + HID, _BCOL].set(b2)
    slab = slab.at[_R3:_R3 + OUT_DIM, 0:HID].set(w3)
    slab = slab.at[_R3:_R3 + OUT_DIM, _BCOL].set(b3)
    return slab


def pack_inputs(x, *, tb=TB_DEFAULT):
    """[B, IN_DIM] -> sublane/lane-dense packed [8, BP // N_SUB], BP = ceil(B/tb)*tb."""
    b = x.shape[0]
    n_tiles = pl.cdiv(b, tb)
    bp = n_tiles * tb
    tbl = tb // N_SUB
    xpad = jnp.zeros((bp, IN_DIM), jnp.float32).at[:b, :].set(x.astype(jnp.float32))
    xr = xpad.reshape(n_tiles, N_SUB, tbl, IN_DIM)          # (tile, chunk, lane, feat)
    return xr.transpose(1, 3, 0, 2).reshape(PACK_IN_ROWS, n_tiles * tbl)


def unpack_outputs(op, b, *, tb=TB_DEFAULT):
    """Packed [8, BP // N_HALF] kernel output -> [b, OUT_DIM]."""
    tbh = tb // N_HALF
    n_tiles = op.shape[1] // tbh
    opr = op.reshape(N_HALF, OUT_DIM, n_tiles, tbh)         # (half, feat, tile, lane)
    out = opr.transpose(2, 0, 3, 1).reshape(n_tiles * tb, OUT_DIM)
    return out[:b]


@functools.partial(jax.jit, static_argnames=("tb",))
def quadrant_classifier_forward_packed(xp, slab, *, tb=TB_DEFAULT):
    """Fast path: caller owns the packed lane-dense layout -> zero wrapper copies."""
    return _pallas_forward_packed(xp, slab, tb)


@functools.partial(jax.jit, static_argnames=("tb",))
def quadrant_classifier_forward(x, slab, *, tb=TB_DEFAULT):
    """Module-compatible forward: x [B, IN_DIM] f32 -> [B, OUT_DIM] f32."""
    b = x.shape[0]
    xp = pack_inputs(x, tb=tb)
    op = _pallas_forward_packed(xp, slab, tb)
    return unpack_outputs(op, b, tb=tb)


def init_params(key, layer_dims):
    """PyTorch nn.Linear default init: U(-1/sqrt(fan_in), 1/sqrt(fan_in)); W [out,in], b [out]."""
    params = []
    for fan_in, fan_out in layer_dims:
        key, kw, kb = jax.random.split(key, 3)
        bound = 1.0 / float(fan_in) ** 0.5
        w = jax.random.uniform(kw, (fan_out, fan_in), jnp.float32, -bound, bound)
        bb = jax.random.uniform(kb, (fan_out,), jnp.float32, -bound, bound)
        params.append((w, bb))
    return params


def reference_forward(x, params):
    h = x
    for i, (w, bb) in enumerate(params):
        h = h @ w.T + bb
        if i < len(params) - 1:
            h = jnp.maximum(h, 0.0)
    return h


if __name__ == "__main__":
    key = jax.random.PRNGKey(0)
    key, kx1, kx2 = jax.random.split(key, 3)
    params = init_params(key, LAYER_DIMS)
    slab = pack_params(params)                      # packed ONCE at init (hoisted out of forward)

    # Small batch: pads to one 512-wide tile -> single grid step.
    B1 = 256
    x1 = jax.random.normal(kx1, (B1, IN_DIM), jnp.float32)
    out1 = jax.block_until_ready(quadrant_classifier_forward(x1, slab, tb=512))
    ref1 = reference_forward(x1, params)
    assert out1.shape == (B1, OUT_DIM)
    err1 = float(jnp.max(jnp.abs(out1 - ref1)))
    assert jnp.allclose(out1, ref1, atol=1e-4, rtol=1e-4), err1

    # Ragged, multi-tile batch exercising the padding path (review correctness concern).
    B2 = 1234
    x2 = jax.random.normal(kx2, (B2, IN_DIM), jnp.float32)
    out2 = jax.block_until_ready(quadrant_classifier_forward(x2, slab, tb=512))
    ref2 = reference_forward(x2, params)
    assert out2.shape == (B2, OUT_DIM)
    err2 = float(jnp.max(jnp.abs(out2 - ref2)))
    assert jnp.allclose(out2, ref2, atol=1e-4, rtol=1e-4), err2

    # Lane-dense fast path (caller-owned packed layout; no wrapper transposes).
    xp1 = pack_inputs(x1, tb=512)
    op1 = jax.block_until_ready(quadrant_classifier_forward_packed(xp1, slab, tb=512))
    out3 = unpack_outputs(op1, B1, tb=512)
    assert jnp.allclose(out3, ref1, atol=1e-4, rtol=1e-4)

    print("KERNEL_OK")
</pallas_src>

<mosaic_0001>
module attributes {stable_mosaic.version = 11 : i64} {
  func.func @_mlp_kernel(%arg0: i32, %arg1: memref<72x33xf32, #tpu.memory_space<vmem>>, %arg2: memref<8x128xf32, #tpu.memory_space<vmem>>, %arg3: memref<8x256xf32, #tpu.memory_space<vmem>>) attributes {dimension_semantics = [#tpu.dimension_semantics<arbitrary>], iteration_bounds = array<i64: 1>, scalar_prefetch = 0 : i64, scratch_operands = 0 : i64, tpu.core_type = #tpu.core_type<tc>, window_params = [{pipeline_mode = #tpu.pipeline_mode<synchronous>, transform_indices = @transform_0, window_bounds = array<i64: 72, 33>}, {transform_indices = @transform_1, window_bounds = array<i64: 8, 128>}, {transform_indices = @transform_2, window_bounds = array<i64: 8, 256>}]} {
    %c0 = arith.constant 0 : index
    %c0_0 = arith.constant 0 : index
    %0 = vector.load %arg2[%c0, %c0_0] : memref<8x128xf32, #tpu.memory_space<vmem>>, vector<8x128xf32>
    %c0_1 = arith.constant 0 : index
    %c0_2 = arith.constant 0 : index
    %1 = vector.load %arg1[%c0_1, %c0_2] : memref<72x33xf32, #tpu.memory_space<vmem>>, vector<32x2xf32>
    %c0_3 = arith.constant 0 : index
    %c32 = arith.constant 32 : index
    %2 = vector.load %arg1[%c0_3, %c32] : memref<72x33xf32, #tpu.memory_space<vmem>>, vector<32x1xf32>
    %c32_4 = arith.constant 32 : index
    %c0_5 = arith.constant 0 : index
    %3 = vector.load %arg1[%c32_4, %c0_5] : memref<72x33xf32, #tpu.memory_space<vmem>>, vector<32x32xf32>
    %c32_6 = arith.constant 32 : index
    %c32_7 = arith.constant 32 : index
    %4 = vector.load %arg1[%c32_6, %c32_7] : memref<72x33xf32, #tpu.memory_space<vmem>>, vector<32x1xf32>
    %c64 = arith.constant 64 : index
    %c0_8 = arith.constant 0 : index
    %5 = vector.load %arg1[%c64, %c0_8] : memref<72x33xf32, #tpu.memory_space<vmem>>, vector<4x32xf32>
    %c64_9 = arith.constant 64 : index
    %c32_10 = arith.constant 32 : index
    %6 = vector.load %arg1[%c64_9, %c32_10] : memref<72x33xf32, #tpu.memory_space<vmem>>, vector<4x1xf32>
    %7 = vector.extract_strided_slice %0 {offsets = [0, 0], sizes = [1, 128], strides = [1, 1]} : vector<8x128xf32> to vector<1x128xf32>
    %8 = vector.extract_strided_slice %0 {offsets = [2, 0], sizes = [1, 128], strides = [1, 1]} : vector<8x128xf32> to vector<1x128xf32>
    %9 = vector.extract_strided_slice %0 {offsets = [4, 0], sizes = [1, 128], strides = [1, 1]} : vector<8x128xf32> to vector<1x128xf32>
    %10 = vector.extract_strided_slice %0 {offsets = [6, 0], sizes = [1, 128], strides = [1, 1]} : vector<8x128xf32> to vector<1x128xf32>
    %11 = tpu.concatenate %7, %8, %9, %10 in 1 : vector<1x128xf32>, vector<1x128xf32>, vector<1x128xf32>, vector<1x128xf32> -> vector<1x512xf32>
    %12 = vector.extract_strided_slice %0 {offsets = [1, 0], sizes = [1, 128], strides = [1, 1]} : vector<8x128xf32> to vector<1x128xf32>
    %13 = vector.extract_strided_slice %0 {offsets = [3, 0], sizes = [1, 128], strides = [1, 1]} : vector<8x128xf32> to vector<1x128xf32>
    %14 = vector.extract_strided_slice %0 {offsets = [5, 0], sizes = [1, 128], strides = [1, 1]} : vector<8x128xf32> to vector<1x128xf32>
    %15 = vector.extract_strided_slice %0 {offsets = [7, 0], sizes = [1, 128], strides = [1, 1]} : vector<8x128xf32> to vector<1x128xf32>
    %16 = tpu.concatenate %12, %13, %14, %15 in 1 : vector<1x128xf32>, vector<1x128xf32>, vector<1x128xf32>, vector<1x128xf32> -> vector<1x512xf32>
    %17 = vector.extract_strided_slice %1 {offsets = [0, 0], sizes = [32, 1], strides = [1, 1]} : vector<32x2xf32> to vector<32x1xf32>
    %18 = vector.broadcast %17 : vector<32x1xf32> to vector<32x512xf32>
    %19 = vector.broadcast %11 : vector<1x512xf32> to vector<32x512xf32>
    %20 = arith.mulf %18, %19 : vector<32x512xf32>
    %21 = vector.extract_strided_slice %1 {offsets = [0, 1], sizes = [32, 1], strides = [1, 1]} : vector<32x2xf32> to vector<32x1xf32>
    %22 = vector.broadcast %21 : vector<32x1xf32> to vector<32x512xf32>
    %23 = vector.broadcast %16 : vector<1x512xf32> to vector<32x512xf32>
    %24 = arith.mulf %22, %23 : vector<32x512xf32>
    %25 = arith.addf %20, %24 : vector<32x512xf32>
    %26 = vector.broadcast %2 : vector<32x1xf32> to vector<32x512xf32>
    %27 = arith.addf %25, %26 : vector<32x512xf32>
    %cst = arith.constant 0.000000e+00 : f32
    %28 = vector.broadcast %cst : f32 to vector<32x512xf32>
    %29 = arith.maximumf %27, %28 : vector<32x512xf32>
    %cst_11 = arith.constant dense<0.000000e+00> : vector<32x512xf32>
    %30 = tpu.matmul %3, %29, %cst_11 {dimension_numbers = #tpu.dot_dimension_numbers<[1], [0], [0], [1], [0, 0, 1, 1], [], []>} : vector<32x32xf32>, vector<32x512xf32>, vector<32x512xf32> -> vector<32x512xf32>
    %31 = vector.broadcast %4 : vector<32x1xf32> to vector<32x512xf32>
    %32 = arith.addf %30, %31 : vector<32x512xf32>
    %cst_12 = arith.constant 0.000000e+00 : f32
    %33 = vector.broadcast %cst_12 : f32 to vector<32x512xf32>
    %34 = arith.maximumf %32, %33 : vector<32x512xf32>
    %cst_13 = arith.constant dense<0.000000e+00> : vector<4x512xf32>
    %35 = tpu.matmul %5, %34, %cst_13 {dimension_numbers = #tpu.dot_dimension_numbers<[1], [0], [0], [1], [0, 0, 1, 1], [], []>} : vector<4x32xf32>, vector<32x512xf32>, vector<4x512xf32> -> vector<4x512xf32>
    %36 = vector.broadcast %6 : vector<4x1xf32> to vector<4x512xf32>
    %37 = arith.addf %35, %36 : vector<4x512xf32>
    %38 = vector.extract_strided_slice %37 {offsets = [0, 0], sizes = [4, 256], strides = [1, 1]} : vector<4x512xf32> to vector<4x256xf32>
    %c0_14 = arith.constant 0 : index
    %c0_15 = arith.constant 0 : index
    %39 = vector.load %arg3[%c0_14, %c0_15] : memref<8x256xf32, #tpu.memory_space<vmem>>, vector<4x256xf32>
    tpu.vector_store %arg3[%c0_14, %c0_15], %38 {strides = array<i32>} : memref<8x256xf32, #tpu.memory_space<vmem>>, vector<4x256xf32>,
    %40 = vector.extract_strided_slice %37 {offsets = [0, 256], sizes = [4, 256], strides = [1, 1]} : vector<4x512xf32> to vector<4x256xf32>
    %c4 = arith.constant 4 : index
    %c0_16 = arith.constant 0 : index
    %41 = vector.load %arg3[%c4, %c0_16] : memref<8x256xf32, #tpu.memory_space<vmem>>, vector<4x256xf32>
    tpu.vector_store %arg3[%c4, %c0_16], %40 {strides = array<i32>} : memref<8x256xf32, #tpu.memory_space<vmem>>, vector<4x256xf32>,
    return
  }
  func.func @transform_0(%arg0: i32) -> (i32, i32) {
    %c0_i32 = arith.constant 0 : i32
    %c0_i32_0 = arith.constant 0 : i32
    %c0_i32_1 = arith.constant 0 : i32
    return %c0_i32, %c0_i32_0 : i32, i32
  }
  func.func @transform_1(%arg0: i32) -> (i32, i32) {
    %c0_i32 = arith.constant 0 : i32
    %c0_i32_0 = arith.constant 0 : i32
    return %c0_i32, %arg0 : i32, i32
  }
  func.func @transform_2(%arg0: i32) -> (i32, i32) {
    %c0_i32 = arith.constant 0 : i32
    %c0_i32_0 = arith.constant 0 : i32
    return %c0_i32, %arg0 : i32, i32
  }
}

</mosaic_0001>

<bundles_post_ra>
// kernel: quadrant_classifier_forward.1
= control target key start
LH: loop header
LB: loop body
LE: loop exit
PB: predicated region body
PF: predicated region fallthrough
CT: control target
= control target key end

     0   :  { %v463_v0 = vmov 0   ;;  %v464_v4 = vmov 1   ;;  %v465_v6 = vmov 32   ;;  %vm188_vm0 = vcmask 261120   ;;  %s584_s0 = inlined_call_operand.vmem [shape: f32[72,33], index: 0, kind: input, shape index: {}]   ;;  %s585_s1 = inlined_call_operand.vmem [shape: f32[8,128], index: 1, kind: input, shape index: {}]   ;;  %s586_s2 = inlined_call_operand.vmem [shape: f32[8,256], index: 2, kind: output, shape index: {}]  }
   0x1   :  { %455 = vset.pattern.permute.xlu1 %v463_v0  ;;  %453 = vset.pattern.permute.xlu0 %v463_v0  ;;  %v15_v1 = vld [vmem:[%s584_s0 + $0x18] sm:$0xff]  ;;  %v14_v2 = vld [vmem:[%s584_s0 + $0x10] sm:$0xff]  ;;  %v13_v3 = vld [vmem:[%s584_s0 + $0x8] sm:$0xff] }
   0x2   :  { %45 = vperm.xlu0 %453, %v15_v1   ;;  %40 = vperm.xlu1 %455, %v14_v2   ;;  %v12_v5 = vld [vmem:[%s584_s0] sm:$0xff]  ;;  %v496_v7 = vld [vmem:[%s584_s0 + $0x38] sm:$0xff]  ;;  %v508_v9 = vld [vmem:[%s584_s0 + $0x30] sm:$0xff] }
   0x3   :  { %457 = vset.pattern.permute.xlu2 %v463_v0  ;;  %v501_v8 = vld [vmem:[%s584_s0 + $0x40] sm:$0xf]  ;;  %v514_v10 = vld [vmem:[%s584_s0 + $0x28] sm:$0xff] }
   0x4   :  { %35 = vperm.xlu2 %457, %v13_v3   ;;  %v520_v11 = vld [vmem:[%s584_s0 + $0x20] sm:$0xff] }
   0x5   :  { %v11_v14 = vld [vmem:[%s585_s1] sm:$0xff] }
   0x6   :  { %v22_v17 = vrot.slane %v11_v14, 2  ;;  %v24_v18 = vrot.slane %v11_v14, 4  ;;  %v26_v19 = vrot.slane %v11_v14, 6  ;;  %v48_v20 = vperm.slane %v11_v14, 0 }
   0x7   :  { %v84_v24 = vperm.slane %v11_v14, 1 }
   0x8   :  { %v49_v21 = vperm.slane %v22_v17, 0  ;;  %v50_v22 = vperm.slane %v24_v18, 0  ;;  %v51_v23 = vperm.slane %v26_v19, 0  ;;  %v85_v25 = vperm.slane %v22_v17, 1 }
   0x9   :  { %v86_v26 = vperm.slane %v24_v18, 1  ;;  %v87_v27 = vperm.slane %v26_v19, 1 }
   0xa   :  { %454 = vset.pattern.permute.xlu0 %v464_v4  ;;  %456 = vset.pattern.permute.xlu1 %v464_v4 }
   0xb   :  { %81 = vperm.xlu0 %454, %v15_v1   ;;  %77 = vperm.xlu1 %456, %v14_v2  }
   0xc   :  { %458 = vset.pattern.permute.xlu2 %v464_v4 }
   0xd   :  { %73 = vperm.xlu2 %458, %v13_v3  }
  0x13   :  { %459 = vset.pattern.permute.xlu1 %v465_v6  ;;  %69 = vperm.xlu0 %454, %v12_v5  }
  0x14   :  { %133 = vperm.xlu1 %459, %v15_v1  }
  0x15   :  { %460 = vset.pattern.permute.xlu2 %v463_v0 }
  0x16   :  { %30 = vperm.xlu2 %460, %v12_v5  }
  0x1b   :  { %462 = vset.pattern.permute.xlu0 %v465_v6 }
  0x1c   :  { %129 = vperm.xlu1 %459, %v14_v2   ;;  %121 = vperm.xlu0 %462, %v12_v5  }
  0x1e   :  { %461 = vset.pattern.permute.xlu2 %v465_v6 }
  0x1f   :  { %125 = vperm.xlu2 %461, %v13_v3  }
  0x24   :  { %185 = vperm.xlu1 %459, %v496_v7   ;;  %331 = vperm.xlu0 %462, %v501_v8  }
  0x27   :  { %180 = vperm.xlu2 %461, %v508_v9  }
  0x2c   :  { %175 = vperm.xlu1 %459, %v514_v10  }
  0x2f   :  { %170 = vperm.xlu2 %461, %v520_v11  }
  0x5e   :  { %v36_v12 = vpop.permute.xlu2 %35 }
  0x5f   :  { %v56_v31 = vmul.f32 %v48_v20, %v36_v12  ;;  %v57_v32 = vmul.f32 %v49_v21, %v36_v12  ;;  %v58_v33 = vmul.f32 %v50_v22, %v36_v12  ;;  %v59_v34 = vmul.f32 %v51_v23, %v36_v12 }
  0x67   :  { %v74_v13 = vpop.permute.xlu2 %73 }
  0x68   :  { %v92_v35 = vmul.f32 %v84_v24, %v74_v13  ;;  %v93_v36 = vmul.f32 %v85_v25, %v74_v13  ;;  %v94_v37 = vmul.f32 %v86_v26, %v74_v13  ;;  %v95_v38 = vmul.f32 %v87_v27, %v74_v13 }
  0x6a   :  { %v108_v47 = vadd.f32 %v92_v35, %v56_v31  ;;  %v109_v48 = vadd.f32 %v93_v36, %v57_v32  ;;  %v110_v49 = vadd.f32 %v94_v37, %v58_v33  ;;  %v111_v50 = vadd.f32 %v95_v38, %v59_v34 }
  0x70   :  { %v31_v30 = vpop.permute.xlu2 %30 }
  0x71   :  { %v52_v56 = vmul.f32 %v48_v20, %v31_v30  ;;  %v53_v57 = vmul.f32 %v49_v21, %v31_v30  ;;  %v54_v58 = vmul.f32 %v50_v22, %v31_v30  ;;  %v55_v59 = vmul.f32 %v51_v23, %v31_v30 }
  0x74   :  { %v526_v15 = vpop.permute.xlu1 %40  ;;  %v46_v16 = vpop.permute.xlu0 %45 }
  0x75   :  { %v64_v43 = vmul.f32 %v48_v20, %v46_v16  ;;  %v65_v44 = vmul.f32 %v49_v21, %v46_v16  ;;  %v66_v45 = vmul.f32 %v50_v22, %v46_v16  ;;  %v67_v46 = vmul.f32 %v51_v23, %v46_v16 }
  0x76   :  { %v60_v16 = vmul.f32 %v48_v20, %v526_v15  ;;  %v61_v17 = vmul.f32 %v49_v21, %v526_v15  ;;  %v63_v30 = vmul.f32 %v51_v23, %v526_v15 }
  0x79   :  { %v126_v1 = vpop.permute.xlu2 %125 }
  0x7a   :  { %v140_v31 = vadd.f32 %v126_v1, %v108_v47 }
  0x7d   :  { %v82_v28 = vpop.permute.xlu0 %81  ;;  %v78_v29 = vpop.permute.xlu1 %77 }
  0x7e   :  { %v100_v39 = vmul.f32 %v84_v24, %v82_v28  ;;  %v101_v40 = vmul.f32 %v85_v25, %v82_v28  ;;  %v102_v41 = vmul.f32 %v86_v26, %v82_v28  ;;  %v103_v42 = vmul.f32 %v87_v27, %v82_v28 }
  0x7f   :  { %v96_v2 = vmul.f32 %v84_v24, %v78_v29  ;;  %v97_v3 = vmul.f32 %v85_v25, %v78_v29  ;;  %v98_v4 = vmul.f32 %v86_v26, %v78_v29  ;;  %v99_v5 = vmul.f32 %v87_v27, %v78_v29 }
  0x80   :  { %v116_v52 = vadd.f32 %v100_v39, %v64_v43  ;;  %v117_v53 = vadd.f32 %v101_v40, %v65_v44  ;;  %v118_v54 = vadd.f32 %v102_v41, %v66_v45  ;;  %v119_v55 = vadd.f32 %v103_v42, %v67_v46 }
  0x81   :  { %v62_v28 = vmul.f32 %v50_v22, %v526_v15  ;;  %v141_v29 = vadd.f32 %v126_v1, %v109_v48  ;;  %v112_v34 = vadd.f32 %v96_v2, %v60_v16  ;;  %v113_v35 = vadd.f32 %v97_v3, %v61_v17 }
  0x82   :  { %v115_v20 = vadd.f32 %v99_v5, %v63_v30 }
  0x83   :  { %v114_v36 = vadd.f32 %v98_v4, %v62_v28 }
  0x85   :  { %v70_v51 = vpop.permute.xlu0 %69 }
  0x86   :  { %v134_v60 = vpop.permute.xlu1 %133  ;;  %v88_v18 = vmul.f32 %v84_v24, %v70_v51  ;;  %v89_v19 = vmul.f32 %v85_v25, %v70_v51  ;;  %v90_v32 = vmul.f32 %v86_v26, %v70_v51  ;;  %v91_v33 = vmul.f32 %v87_v27, %v70_v51 }
  0x87   :  { %v148_v61 = vadd.f32 %v134_v60, %v116_v52  ;;  %v149_v62 = vadd.f32 %v134_v60, %v117_v53  ;;  %v150_v63 = vadd.f32 %v134_v60, %v118_v54  ;;  %v151_v0 = vadd.f32 %v134_v60, %v119_v55 }
  0x88   :  { %v142_v24 = vadd.f32 %v126_v1, %v110_v49  ;;  %v143_v25 = vadd.f32 %v126_v1, %v111_v50  ;;  %v104_v38 = vadd.f32 %v88_v18, %v52_v56  ;;  %v105_v22 = vadd.f32 %v89_v19, %v53_v57  ;;  %v181_v1 = vpop.permute.xlu2 %180 }
  0x89   :  { %v164_v6 = vmax.f32 %v148_v61, 0.0  ;;  %v165_v12 = vmax.f32 %v149_v62, 0.0  ;;  %v166_v13 = vmax.f32 %v150_v63, 0.0  ;;  %v167_v14 = vmax.f32 %v151_v0, 0.0 }
  0x8a   :  { %v106_v27 = vadd.f32 %v90_v32, %v54_v58  ;;  %v107_v42 = vadd.f32 %v91_v33, %v55_v59  ;;  %v156_v49 = vmax.f32 %v140_v31, 0.0  ;;  %v157_v50 = vmax.f32 %v141_v29, 0.0 }
  0x8b   :  { %209 = vmatpush.msra.mxu0 %v164_v6  ;;  %238 = vmatpush.msra.mxu1 %v165_v12  ;;  %v158_v51 = vmax.f32 %v142_v24, 0.0  ;;  %v159_v52 = vmax.f32 %v143_v25, 0.0 }
  0x8c   :  { %267 = vmatpush.msra.mxu2 %v166_v13  ;;  %296 = vmatpush.msra.mxu3 %v167_v14 }
  0x8e   :  { %v130_v37 = vpop.permute.xlu1 %129  ;;  %v122_v21 = vpop.permute.xlu0 %121 }
  0x8f   :  { %v144_v39 = vadd.f32 %v130_v37, %v112_v34  ;;  %v145_v15 = vadd.f32 %v130_v37, %v113_v35  ;;  %v146_v23 = vadd.f32 %v130_v37, %v114_v36  ;;  %v147_v40 = vadd.f32 %v130_v37, %v115_v20 }
  0x90   :  { %v136_v41 = vadd.f32 %v122_v21, %v104_v38  ;;  %v137_v26 = vadd.f32 %v122_v21, %v105_v22  ;;  %v138_v47 = vadd.f32 %v122_v21, %v106_v27  ;;  %v139_v48 = vadd.f32 %v122_v21, %v107_v42  ;;  %v171_v28 = vpop.permute.xlu2 %170 }
  0x91   :  { %v160_v43 = vmax.f32 %v144_v39, 0.0  ;;  %v161_v44 = vmax.f32 %v145_v15, 0.0  ;;  %v162_v45 = vmax.f32 %v146_v23, 0.0  ;;  %v163_v46 = vmax.f32 %v147_v40, 0.0 }
  0x92   :  { %v152_v53 = vmax.f32 %v136_v41, 0.0  ;;  %v153_v54 = vmax.f32 %v137_v26, 0.0  ;;  %v154_v55 = vmax.f32 %v138_v47, 0.0  ;;  %v155_v56 = vmax.f32 %v139_v48, 0.0 }
  0x93   :  { %210 = vmatpush.msra.mxu0 %v160_v43  ;;  %239 = vmatpush.msra.mxu1 %v161_v44 }
  0x94   :  { %268 = vmatpush.msra.mxu2 %v162_v45  ;;  %297 = vmatpush.msra.mxu3 %v163_v46 }
  0x95   :  { %211 = vmatpush.msra.mxu0 %v156_v49  ;;  %240 = vmatpush.msra.mxu1 %v157_v50 }
  0x96   :  { %269 = vmatpush.msra.mxu2 %v158_v51  ;;  %298 = vmatpush.msra.mxu3 %v159_v52  ;;  %v186_v61 = vpop.permute.xlu1 %185  ;;  %v332_v46 = vpop.permute.xlu0 %331 }
  0x97   :  { %212 = vmatpush.msra.mxu0 %v152_v53  ;;  %241 = vmatpush.msra.mxu1 %v153_v54 }
  0x98   :  { %270 = vmatpush.msra.mxu2 %v154_v55  ;;  %299 = vmatpush.msra.mxu3 %v155_v56 }
  0x99   :  { %430 = vmatmul.msk.f32.vlgmr.msra.gmra.mxu0 %vm188_vm0, %v520_v11  ;;  %434 = vmatmul.msk.f32.vlgmr.msra.gmra.mxu1 %vm188_vm0, %v520_v11 }
  0x9a   :  { %438 = vmatmul.msk.f32.vlgmr.msra.gmra.mxu2 %vm188_vm0, %v520_v11  ;;  %442 = vmatmul.msk.f32.vlgmr.msra.gmra.mxu3 %vm188_vm0, %v520_v11 }
  0x9e   :  { %v176_v14 = vpop.permute.xlu1 %175 }
  0xa1   :  { %431 = vmatmul.msk.f32.gmra.mxu0 %vm188_vm0, %v514_v10  ;;  %435 = vmatmul.msk.f32.gmra.mxu1 %vm188_vm0, %v514_v10 }
  0xa2   :  { %439 = vmatmul.msk.f32.gmra.mxu2 %vm188_vm0, %v514_v10  ;;  %443 = vmatmul.msk.f32.gmra.mxu3 %vm188_vm0, %v514_v10 }
  0xa9   :  { %432 = vmatmul.msk.f32.gmra.mxu0 %vm188_vm0, %v508_v9  ;;  %436 = vmatmul.msk.f32.gmra.mxu1 %vm188_vm0, %v508_v9 }
  0xaa   :  { %440 = vmatmul.msk.f32.gmra.mxu2 %vm188_vm0, %v508_v9  ;;  %444 = vmatmul.msk.f32.gmra.mxu3 %vm188_vm0, %v508_v9 }
  0xb1   :  { %433 = vmatmul.msk.f32.gmra.mxu0 %vm188_vm0, %v496_v7  ;;  %437 = vmatmul.msk.f32.gmra.mxu1 %vm188_vm0, %v496_v7 }
  0xb2   :  { %441 = vmatmul.msk.f32.gmra.mxu2 %vm188_vm0, %v496_v7  ;;  %445 = vmatmul.msk.f32.gmra.mxu3 %vm188_vm0, %v496_v7 }
 0x116   :  { %v214_v10 = vpop.f32.mrf.mxu0  ;;  %v243_v11 = vpop.f32.mrf.mxu1 }
 0x117   :  { %v215_v30 = vadd.f32 %v214_v10, %v171_v28  ;;  %v244_v31 = vadd.f32 %v243_v11, %v171_v28 }
 0x119   :  { %v313_v25 = vmax.f32 %v215_v30, 0.0  ;;  %v314_v38 = vmax.f32 %v244_v31, 0.0 }
 0x11d   :  { %v272_v57 = vpop.f32.mrf.mxu2  ;;  %v301_v58 = vpop.f32.mrf.mxu3 }
 0x11e   :  { %v217_v59 = vpop.f32.mrf.mxu0  ;;  %v246_v60 = vpop.f32.mrf.mxu1  ;;  %v273_v40 = vadd.f32 %v272_v57, %v171_v28  ;;  %v302_v41 = vadd.f32 %v301_v58, %v171_v28 }
 0x11f   :  { %v218_v16 = vadd.f32 %v217_v59, %v176_v14  ;;  %v247_v17 = vadd.f32 %v246_v60, %v176_v14 }
 0x120   :  { %v315_v44 = vmax.f32 %v273_v40, 0.0  ;;  %v316_v45 = vmax.f32 %v302_v41, 0.0 }
 0x121   :  { %v317_v29 = vmax.f32 %v218_v16, 0.0  ;;  %v318_v34 = vmax.f32 %v247_v17, 0.0 }
 0x125   :  { %v275_v9 = vpop.f32.mrf.mxu2  ;;  %v304_v62 = vpop.f32.mrf.mxu3 }
 0x126   :  { %v220_v63 = vpop.f32.mrf.mxu0  ;;  %v249_v0 = vpop.f32.mrf.mxu1  ;;  %v276_v22 = vadd.f32 %v275_v9, %v176_v14  ;;  %v305_v39 = vadd.f32 %v304_v62, %v176_v14 }
 0x127   :  { %v221_v6 = vadd.f32 %v220_v63, %v181_v1  ;;  %v250_v12 = vadd.f32 %v249_v0, %v181_v1 }
 0x128   :  { %v319_v42 = vmax.f32 %v276_v22, 0.0  ;;  %v320_v43 = vmax.f32 %v305_v39, 0.0 }
 0x129   :  { %v321_v32 = vmax.f32 %v221_v6, 0.0  ;;  %v322_v33 = vmax.f32 %v250_v12, 0.0 }
 0x12d   :  { %v278_v2 = vpop.f32.mrf.mxu2  ;;  %v307_v3 = vpop.f32.mrf.mxu3 }
 0x12e   :  { %v223_v4 = vpop.f32.mrf.mxu0  ;;  %v252_v5 = vpop.f32.mrf.mxu1  ;;  %v279_v20 = vadd.f32 %v278_v2, %v181_v1  ;;  %v308_v37 = vadd.f32 %v307_v3, %v181_v1 }
 0x12f   :  { %v224_v13 = vadd.f32 %v223_v4, %v186_v61  ;;  %v253_v7 = vadd.f32 %v252_v5, %v186_v61 }
 0x130   :  { %v323_v26 = vmax.f32 %v279_v20, 0.0  ;;  %v324_v27 = vmax.f32 %v308_v37, 0.0 }
 0x131   :  { %v325_v18 = vmax.f32 %v224_v13, 0.0  ;;  %v326_v19 = vmax.f32 %v253_v7, 0.0 }
 0x133   :  { %348 = vmatpush.msrb.mxu0 %v325_v18  ;;  %368 = vmatpush.msrb.mxu1 %v326_v19 }
 0x135   :  { %v281_v35 = vpop.f32.mrf.mxu2  ;;  %v310_v36 = vpop.f32.mrf.mxu3  ;;  %349 = vmatpush.msrb.mxu0 %v321_v32  ;;  %369 = vmatpush.msrb.mxu1 %v322_v33 }
 0x136   :  { %v282_v21 = vadd.f32 %v281_v35, %v186_v61  ;;  %v311_v24 = vadd.f32 %v310_v36, %v186_v61 }
 0x137   :  { %350 = vmatpush.msrb.mxu0 %v317_v29  ;;  %370 = vmatpush.msrb.mxu1 %v318_v34 }
 0x138   :  { %v327_v15 = vmax.f32 %v282_v21, 0.0  ;;  %v328_v23 = vmax.f32 %v311_v24, 0.0 }
 0x139   :  { %351 = vmatpush.msrb.mxu0 %v313_v25  ;;  %371 = vmatpush.msrb.mxu1 %v314_v38 }
 0x13a   :  { %388 = vmatpush.msrb.mxu2 %v327_v15  ;;  %408 = vmatpush.msrb.mxu3 %v328_v23 }
 0x13b   :  { %446 = vmatmul.msk.f32.vlgmr.msrb.gmra.mxu0 %vm188_vm0, %v501_v8  ;;  %447 = vmatmul.msk.f32.vlgmr.msrb.gmra.mxu1 %vm188_vm0, %v501_v8 }
 0x13c   :  { %389 = vmatpush.msrb.mxu2 %v323_v26  ;;  %409 = vmatpush.msrb.mxu3 %v324_v27 }
 0x13e   :  { %390 = vmatpush.msrb.mxu2 %v319_v42  ;;  %410 = vmatpush.msrb.mxu3 %v320_v43 }
 0x140   :  { %391 = vmatpush.msrb.mxu2 %v315_v44  ;;  %411 = vmatpush.msrb.mxu3 %v316_v45 }
 0x141   :  { %448 = vmatmul.msk.f32.vlgmr.msrb.gmra.mxu2 %vm188_vm0, %v501_v8  ;;  %449 = vmatmul.msk.f32.vlgmr.msrb.gmra.mxu3 %vm188_vm0, %v501_v8 }
 0x1b8   :  { %v353_v47 = vpop.f32.mrf.mxu0  ;;  %v373_v48 = vpop.f32.mrf.mxu1 }
 0x1b9   :  { %v354_v49 = vadd.f32 %v353_v47, %v332_v46  ;;  %v374_v50 = vadd.f32 %v373_v48, %v332_v46 }
 0x1bb   :  { %416 = vst [vmem:[%s586_s2] sm:$0xf] %v354_v49 }
 0x1bc   :  { %417 = vst [vmem:[%s586_s2 + $0x8] sm:$0xf] %v374_v50 }
 0x1c4   :  { %v393_v51 = vpop.f32.mrf.mxu2  ;;  %v413_v52 = vpop.f32.mrf.mxu3 }
 0x1c5   :  { %v394_v53 = vadd.f32 %v393_v51, %v332_v46  ;;  %v414_v54 = vadd.f32 %v413_v52, %v332_v46 }
 0x1c7   :  { %v420_v55 = vrot.slane %v394_v53, 4  ;;  %v421_v56 = vrot.slane %v414_v54, 4 }
 0x1c9   :  { %424 = vst [vmem:[%s586_s2] sm:$0xf0] %v420_v55 }
 0x1ca   :  { %425 = vst [vmem:[%s586_s2 + $0x8] sm:$0xf0] %v421_v56 }

</bundles_post_ra>
